<compile_context>
chip_gen: v6e
topology: v6e:2x2x1
jax: 0.10.0
libtpu: 0.0.40
codegen_flags: <defaults>
</compile_context>

<pallas_src>
import jax
import jax.numpy as jnp
from jax.experimental import pallas as pl
from jax.experimental.pallas import tpu as pltpu


def _self_attention_kernel(len_ref, x_ref, w_ref, rep_ref, scores_ref):
    """One batch tile: (TB, T, H) inputs -> (TB, H) pooled rep + (TB, T) scores."""
    xf = x_ref[...].astype(jnp.float32)            # (TB, T, H) bf16 stream -> f32 compute
    w = w_ref[...].astype(jnp.float32)             # (1, H)
    lens = len_ref[...]                            # (TB, 1) int32
    tb, t, h = xf.shape

    # logits[b, t] = sum_h x[b, t, h] * w[h]  -- batched MXU matvec (q = 1),
    # contracting the last dim of both operands (same pattern as flash attn).
    w_b = jnp.broadcast_to(w[None, :, :], (tb, 1, h))
    logits = jnp.einsum("bqh,bth->bqt", w_b, xf,
                        preferred_element_type=jnp.float32)[:, 0, :]   # (TB, T)
    s = jnp.tanh(logits)

    # Masked softmax over T.  PyTorch does softmax -> mask -> renormalize; the
    # first normalization cancels algebraically, so do it in one pass:
    #   scores = mask * exp(s - max) / sum(mask * exp(s - max))
    t_idx = jax.lax.broadcasted_iota(jnp.int32, (tb, t), 1)
    mask = t_idx < lens                            # (TB,1) lens broadcasts over T
    e = jnp.where(mask, jnp.exp(s - jnp.max(s, axis=-1, keepdims=True)), 0.0)
    # NOTE: length == 0 rows give 0/0 -> NaN, matching the PyTorch module.
    scores = e / jnp.sum(e, axis=-1, keepdims=True)

    # representations[b, h] = sum_t scores[b, t] * x[b, t, h]  (MXU, q = 1).
    rep = jnp.einsum("bqt,bth->bqh", scores[:, None, :], xf,
                     preferred_element_type=jnp.float32)[:, 0, :]      # (TB, H)

    rep_ref[...] = rep.astype(rep_ref.dtype)
    scores_ref[...] = scores.astype(scores_ref.dtype)


def _vmem_budgets():
    """Per-generation (x_block_bytes, vmem_limit_bytes).

    Per grid step the kernel holds ~2x the streamed block (double buffer) plus
    ~2x in the f32 upcast temporary, so budgets keep 4*x_block well under the
    scoped limit.
    """
    try:
        cap = int(getattr(pltpu.get_tpu_info(), "vmem_capacity_bytes", 0))
    except Exception:
        cap = 0
    if cap <= 0:
        cap = 64 << 20                       # conservative default (v7x per-TC)
    if cap <= (64 << 20):
        # v7x: 64 MiB physical per TC; big block to amortize ~0.35us/step at
        # 3.2 TB/s, but leave room for the f32 upcast + double buffers.
        return 8 << 20, 44 << 20
    # v5e / v6e: 128 MiB physical VMEM -> larger block, higher scoped limit.
    return 12 << 20, 64 << 20


def _pick_block_b(B, T, H, itemsize, x_block_bytes, min_steps=8):
    """Largest multiple-of-8 batch tile fitting the block budget while keeping
    >= min_steps grid steps (so the double-buffered pipeline overlaps and the
    v7x megacore split still gets several steps per core).  Problems that fit
    a single block skip the tiled path entirely."""
    row_bytes = T * H * itemsize
    if B * row_bytes <= x_block_bytes or B <= 8:
        return B                                    # small-problem fast path
    rows_budget = max(8, (x_block_bytes // row_bytes) // 8 * 8)
    rows_steps = max(8, (B // min_steps) // 8 * 8)  # keep >= min_steps steps
    return int(min(B, rows_budget, rows_steps))


def self_attention(inputs, attention_weights, lengths, *,
                   block_b=None, stream_dtype=jnp.bfloat16):
    """inputs: (B, T, H), attention_weights: (H,), lengths: (B,) int.

    Returns (representations (B, H), scores (B, T)) matching the PyTorch
    module's forward (for B > 1 the final .squeeze() is a no-op).
    """
    B, T, H = inputs.shape
    itemsize = jnp.dtype(stream_dtype).itemsize
    x = inputs.astype(stream_dtype)                 # halve streamed HBM bytes (bf16)
    w2 = attention_weights.reshape(1, H).astype(jnp.float32)
    len2 = lengths.reshape(B, 1).astype(jnp.int32)

    x_block_bytes, vmem_limit = _vmem_budgets()
    if block_b is None:
        tb = _pick_block_b(B, T, H, itemsize, x_block_bytes)
    else:
        tb = min(int(block_b), B)
    grid = (pl.cdiv(B, tb),)

    cost = pl.CostEstimate(
        flops=4 * B * T * H,                         # matvec + weighted pooling
        transcendentals=2 * B * T,                   # tanh + exp per (b, t)
        bytes_accessed=(B * T * H * itemsize         # streamed x
                        + H * 4 + B * 4              # weights + lengths
                        + B * H * 4 + B * T * 4),    # rep + scores
    )

    rep, scores = pl.pallas_call(
        _self_attention_kernel,
        out_shape=(
            jax.ShapeDtypeStruct((B, H), jnp.float32),
            jax.ShapeDtypeStruct((B, T), jnp.float32),
        ),
        grid=grid,
        in_specs=[
            pl.BlockSpec((tb, 1), lambda i: (i, 0)),        # lengths
            pl.BlockSpec((tb, T, H), lambda i: (i, 0, 0)),  # inputs (streamed, bf16)
            pl.BlockSpec((1, H), lambda i: (0, 0)),         # weights (resident)
        ],
        out_specs=(
            pl.BlockSpec((tb, H), lambda i: (i, 0)),        # representations
            pl.BlockSpec((tb, T), lambda i: (i, 0)),        # scores
        ),
        compiler_params=pltpu.CompilerParams(
            dimension_semantics=("parallel",),   # megacore split over batch tiles
            vmem_limit_bytes=vmem_limit,
        ),
        cost_estimate=cost,
    )(len2, x, w2)
    return rep, scores
    # TODO(synk): if scores/rep are consumed by another Pallas kernel at small
    # T/H with very large B, emit them lane-padded to a 128-multiple to avoid
    # masked vst.msk partial stores; output bytes are negligible here.


def _reference(inputs, attention_weights, lengths):
    # Pure-JAX reference mirroring the PyTorch forward.
    s = jnp.tanh(inputs @ attention_weights)
    p = jax.nn.softmax(s, axis=-1)
    B, T = p.shape
    mask = (jnp.arange(T)[None, :] < lengths[:, None]).astype(p.dtype)
    masked = p * mask
    scores = masked / jnp.sum(masked, axis=-1, keepdims=True)
    rep = jnp.sum(inputs * scores[:, :, None], axis=1)
    return rep, scores


if __name__ == "__main__":
    # Small shapes consistent with the module: attention_size (hidden) = 32,
    # seq = 8, batch = 16.
    B, T, H = 16, 8, 32

    key = jax.random.PRNGKey(0)
    k_x, k_w = jax.random.split(key)
    x = jax.random.normal(k_x, (B, T, H), dtype=jnp.float32)
    # nn.init.uniform_(attention_weights, -0.005, 0.005)
    w = jax.random.uniform(k_w, (H,), minval=-0.005, maxval=0.005,
                           dtype=jnp.float32)
    lengths = jnp.array([8, 5, 7, 3, 8, 1, 6, 4, 8, 2, 5, 7, 8, 3, 6, 8],
                        dtype=jnp.int32)

    # Default path: the whole problem fits one block (single-step grid).
    rep, scores = self_attention(x, w, lengths)
    # Tiled/pipelined path: block_b=8 -> 2 grid steps.
    rep_t, scores_t = self_attention(x, w, lengths, block_b=8)
    # f32-streamed variant (exact-input path).
    rep_f, scores_f = self_attention(x, w, lengths, stream_dtype=jnp.float32)
    jax.block_until_ready((rep, scores, rep_t, scores_t, rep_f, scores_f))

    # bf16-streamed kernel vs reference on the bf16-rounded inputs (kernel
    # upcasts to f32 in-VMEM, so only the input rounding differs).
    x_rounded = x.astype(jnp.bfloat16).astype(jnp.float32)
    rep_ref_b, scores_ref_b = _reference(x_rounded, w, lengths)
    # f32-streamed kernel vs the exact f32 reference.
    rep_ref_f, scores_ref_f = _reference(x, w, lengths)

    t_idx = jnp.arange(T)[None, :]
    checks = [
        (rep, scores, rep_ref_b, scores_ref_b),
        (rep_t, scores_t, rep_ref_b, scores_ref_b),
        (rep_f, scores_f, rep_ref_f, scores_ref_f),
    ]
    for r, s, r_ref, s_ref in checks:
        # MXU accumulation order differs from the reference's elementwise sum,
        # so parity is tolerance-level, not bitwise.
        assert jnp.allclose(r, r_ref, atol=1e-5, rtol=5e-4)
        assert jnp.allclose(s, s_ref, atol=1e-5, rtol=5e-4)
        # masked (padded) positions must be exactly zero
        pad_leak = jnp.abs(jnp.where(t_idx >= lengths[:, None], s, 0.0)).sum()
        assert float(pad_leak) == 0.0

    print("KERNEL_OK")
</pallas_src>

<mosaic_0001>
module attributes {stable_mosaic.version = 11 : i64} {
  func.func @_self_attention_kernel(%arg0: i32, %arg1: memref<16x1xi32, #tpu.memory_space<vmem>>, %arg2: memref<16x8x32xbf16, #tpu.memory_space<vmem>>, %arg3: memref<1x32xf32, #tpu.memory_space<vmem>>, %arg4: memref<16x32xf32, #tpu.memory_space<vmem>>, %arg5: memref<16x8xf32, #tpu.memory_space<vmem>>) attributes {dimension_semantics = [#tpu.dimension_semantics<parallel>], iteration_bounds = array<i64: 1>, scalar_prefetch = 0 : i64, scratch_operands = 0 : i64, tpu.core_type = #tpu.core_type<tc>, window_params = [{transform_indices = @transform_0, window_bounds = array<i64: 16, 1>}, {transform_indices = @transform_1, window_bounds = array<i64: 16, 8, 32>}, {pipeline_mode = #tpu.pipeline_mode<synchronous>, transform_indices = @transform_2, window_bounds = array<i64: 1, 32>}, {transform_indices = @transform_3, window_bounds = array<i64: 16, 32>}, {transform_indices = @transform_4, window_bounds = array<i64: 16, 8>}]} {
    %c0 = arith.constant 0 : index
    %c0_0 = arith.constant 0 : index
    %c0_1 = arith.constant 0 : index
    %0 = vector.load %arg2[%c0, %c0_0, %c0_1] : memref<16x8x32xbf16, #tpu.memory_space<vmem>>, vector<16x8x32xbf16>
    %1 = arith.extf %0 : vector<16x8x32xbf16> to vector<16x8x32xf32>
    %c0_2 = arith.constant 0 : index
    %c0_3 = arith.constant 0 : index
    %2 = vector.load %arg3[%c0_2, %c0_3] : memref<1x32xf32, #tpu.memory_space<vmem>>, vector<1x32xf32>
    %c0_4 = arith.constant 0 : index
    %c0_5 = arith.constant 0 : index
    %3 = vector.load %arg1[%c0_4, %c0_5] : memref<16x1xi32, #tpu.memory_space<vmem>>, vector<16x1xi32>
    %4 = vector.shape_cast %2 : vector<1x32xf32> to vector<1x1x32xf32>
    %5 = vector.shape_cast %4 : vector<1x1x32xf32> to vector<1x1x32xf32>
    %6 = vector.broadcast %5 : vector<1x1x32xf32> to vector<16x1x32xf32>
    "tpu.trace_start"() <{level = 10 : i32, message = "bqh,bth->bqt"}> : () -> ()
    %cst = arith.constant dense<0.000000e+00> : vector<16x1x8xf32>
    %7 = tpu.matmul %6, %1, %cst {dimension_numbers = #tpu.dot_dimension_numbers<[2], [2], [1], [1], [0, 0, 0, 1, 1, 1], [0], [0]>} : vector<16x1x32xf32>, vector<16x8x32xf32>, vector<16x1x8xf32> -> vector<16x1x8xf32>
    "tpu.trace_stop"() : () -> ()
    %8 = vector.shape_cast %7 : vector<16x1x8xf32> to vector<16x8xf32>
    %9 = math.tanh %8 : vector<16x8xf32>
    %10 = tpu.iota {dimensions = array<i32: 1>} : vector<16x8xi32>
    %11 = vector.broadcast %3 : vector<16x1xi32> to vector<16x8xi32>
    %12 = arith.cmpi slt, %10, %11 : vector<16x8xi32>
    %cst_6 = arith.constant dense<0xFF800000> : vector<16xf32>
    %13 = vector.multi_reduction <maximumf>, %9, %cst_6 [1] : vector<16x8xf32> to vector<16xf32>
    %14 = vector.shape_cast %13 : vector<16xf32> to vector<16x1xf32>
    %15 = vector.broadcast %14 : vector<16x1xf32> to vector<16x8xf32>
    %16 = arith.subf %9, %15 : vector<16x8xf32>
    %17 = math.exp %16 : vector<16x8xf32>
    %cst_7 = arith.constant 0.000000e+00 : f32
    %18 = vector.broadcast %cst_7 : f32 to vector<16x8xf32>
    %19 = arith.select %12, %17, %18 : vector<16x8xi1>, vector<16x8xf32>
    %cst_8 = arith.constant dense<0.000000e+00> : vector<16xf32>
    %20 = vector.multi_reduction <add>, %19, %cst_8 [1] : vector<16x8xf32> to vector<16xf32>
    %21 = vector.shape_cast %20 : vector<16xf32> to vector<16x1xf32>
    %22 = vector.broadcast %21 : vector<16x1xf32> to vector<16x8xf32>
    %23 = arith.divf %19, %22 : vector<16x8xf32>
    %24 = vector.shape_cast %23 : vector<16x8xf32> to vector<16x1x8xf32>
    "tpu.trace_start"() <{level = 10 : i32, message = "bqt,bth->bqh"}> : () -> ()
    %cst_9 = arith.constant dense<0.000000e+00> : vector<16x1x32xf32>
    %25 = tpu.matmul %24, %1, %cst_9 {dimension_numbers = #tpu.dot_dimension_numbers<[2], [1], [1], [2], [0, 0, 0, 1, 1, 2], [0], [0]>} : vector<16x1x8xf32>, vector<16x8x32xf32>, vector<16x1x32xf32> -> vector<16x1x32xf32>
    "tpu.trace_stop"() : () -> ()
    %26 = vector.shape_cast %25 : vector<16x1x32xf32> to vector<16x32xf32>
    %c0_10 = arith.constant 0 : index
    %c0_11 = arith.constant 0 : index
    %27 = vector.load %arg4[%c0_10, %c0_11] : memref<16x32xf32, #tpu.memory_space<vmem>>, vector<16x32xf32>
    tpu.vector_store %arg4[%c0_10, %c0_11], %26 {strides = array<i32>} : memref<16x32xf32, #tpu.memory_space<vmem>>, vector<16x32xf32>,
    %c0_12 = arith.constant 0 : index
    %c0_13 = arith.constant 0 : index
    %28 = vector.load %arg5[%c0_12, %c0_13] : memref<16x8xf32, #tpu.memory_space<vmem>>, vector<16x8xf32>
    tpu.vector_store %arg5[%c0_12, %c0_13], %23 {strides = array<i32>} : memref<16x8xf32, #tpu.memory_space<vmem>>, vector<16x8xf32>,
    return
  }
  func.func @transform_0(%arg0: i32) -> (i32, i32) {
    %c0_i32 = arith.constant 0 : i32
    %c0_i32_0 = arith.constant 0 : i32
    return %arg0, %c0_i32 : i32, i32
  }
  func.func @transform_1(%arg0: i32) -> (i32, i32, i32) {
    %c0_i32 = arith.constant 0 : i32
    %c0_i32_0 = arith.constant 0 : i32
    %c0_i32_1 = arith.constant 0 : i32
    return %arg0, %c0_i32, %c0_i32_0 : i32, i32, i32
  }
  func.func @transform_2(%arg0: i32) -> (i32, i32) {
    %c0_i32 = arith.constant 0 : i32
    %c0_i32_0 = arith.constant 0 : i32
    %c0_i32_1 = arith.constant 0 : i32
    return %c0_i32, %c0_i32_0 : i32, i32
  }
  func.func @transform_3(%arg0: i32) -> (i32, i32) {
    %c0_i32 = arith.constant 0 : i32
    %c0_i32_0 = arith.constant 0 : i32
    return %arg0, %c0_i32 : i32, i32
  }
  func.func @transform_4(%arg0: i32) -> (i32, i32) {
    %c0_i32 = arith.constant 0 : i32
    %c0_i32_0 = arith.constant 0 : i32
    return %arg0, %c0_i32 : i32, i32
  }
}

</mosaic_0001>

<bundles_post_ra>
// kernel: tpu_custom_call.1
= control target key start
LH: loop header
LB: loop body
LE: loop exit
PB: predicated region body
PF: predicated region fallthrough
CT: control target
= control target key end

     0   :  { %10 = vsyncpa [#allocation3], 0  ;;  %s3652_s0 = inlined_call_operand.vmem [shape: s32[16,1], index: 0, kind: input, shape index: {}]   ;;  %s3653_s1 = inlined_call_operand.hbm [shape: bf16[16,8,32], index: 1, kind: input, shape index: {}]   ;;  %s3654_s2 = inlined_call_operand.vmem [shape: f32[1,32], index: 2, kind: input, shape index: {}]   ;;  %s3655_s3 = inlined_call_operand.hbm [shape: f32[16,32], index: 3, kind: output, shape index: {0}]   ;;  %s3656_s4 = inlined_call_operand.vmem [shape: f32[16,8], index: 4, kind: output, shape index: {1}]  }
   0x1   :  { %11 = vsyncpa [#allocation4], 0  ;;  %s3220_s15 = smov [#allocation2]  }
   0x2   :  { %s19_s16 = sshll.u32 %s3220_s15, 4  ;;  %s20_s16 = int_to_ptr.vmem [resolvable:$true] %s19_s16 }
   0x3   :  { %s3184_s17 = scalar_lea.vmem %s20_s16, 1024  ;;  %p3189_p1 = scmp.lt.s32.totalorder %s20_s16, %s20_s16 }
   0x4   :  { %p3185_p0 = scmp.ne.s32.totalorder %s20_s16, %s3184_s17  ;;  %p3190_p2 = scmp.lt.s32.totalorder %s3184_s17, %s3184_s17 }
   0x6   :  { %p3191_p3 = por %p3190_p2, %p3189_p1 }
   0x8   :  { %p3192_p4 = pnand %p3191_p3, %p3185_p0 }
   0xa   :  { %3195 = shalt.err (!%p3192_p4)
}
   0xb   :  { %s3221_s18 = smov 64   ;;  %s3222_s19 = smov 4  }
   0xc   :  { %25 = dma.hbm_to_vmem [thread:$0]  %s3653_s1, 1024, %s20_s16, [#allocation3], %s3221_s18, %s3221_s18, %s3222_s19  }
   0xd   :  { %3216 = dma.done.wait [#allocation3], 1024  }
   0xe   :  { %3217 = vsyncadd [#allocation3], 4294966272  ;;  %v3223_v0 = vmov 0.0   ;;  %vm3224_vm0 = vmmov 0   ;;  %v3264_v1 = vld [vmem:[#allocation2] sm:$0xff]   ;;  %vm66_vm1 = vcmask 261120  }
   0xf   :  { %2936 = vmatprep.subr.mxu0 %v3223_v0  ;;  %2941 = vmatprep.subr.mxu1 %v3223_v0  ;;  %v3266_v2 = vld [vmem:[#allocation2 + $0x8] sm:$0xff]   ;;  %v2835_v3 = vunpack.c.l.bf16 %v3264_v1  ;;  %v2836_v4 = vunpack.c.h.bf16 %v3264_v1  ;;  %v3279_v5 = vld [vmem:[%s3654_s2] sm:$0x1]  ;;  %v3285_v8 = vld [vmem:[#allocation2 + $0x10] sm:$0xff]   ;;  %v3225_v27 = vmov 0   ;;  %vm1281_vm2 = vcmask 1041409  }
  0x10   :  { %2938 = vmatprep.mubr.msk.f32.mxu0 %vm3224_vm0, %v3223_v0  ;;  %2943 = vmatprep.mubr.msk.f32.mxu1 %vm3224_vm0, %v3223_v0  ;;  %v2839_v6 = vunpack.c.l.bf16 %v3266_v2  ;;  %v2840_v7 = vunpack.c.h.bf16 %v3266_v2  ;;  %v2843_v9 = vunpack.c.l.bf16 %v3285_v8  ;;  %v2844_v10 = vunpack.c.h.bf16 %v3285_v8  ;;  %v3303_v11 = vld [vmem:[#allocation2 + $0x18] sm:$0xff]   ;;  %v3323_v14 = vld [vmem:[#allocation2 + $0x20] sm:$0xff]   ;;  %v3343_v17 = vld [vmem:[#allocation2 + $0x28] sm:$0xff]  }
  0x11   :  { %2937 = vmatpush3.xpose.msk.msra.mxu0 %vm66_vm1, %v2835_v3  ;;  %2942 = vmatpush3.xpose.msk.msra.mxu1 %vm66_vm1, %v2836_v4  ;;  %v2847_v12 = vunpack.c.l.bf16 %v3303_v11  ;;  %v2848_v13 = vunpack.c.h.bf16 %v3303_v11  ;;  %v2851_v15 = vunpack.c.l.bf16 %v3323_v14  ;;  %v2852_v16 = vunpack.c.h.bf16 %v3323_v14  ;;  %v3363_v20 = vld [vmem:[#allocation2 + $0x30] sm:$0xff]   ;;  %v3383_v23 = vld [vmem:[#allocation2 + $0x38] sm:$0xff]   ;;  %v64_v26 = vld [vmem:[%s3652_s0] sm:$0xff] }
  0x12   :  { %2946 = vmatprep.subr.mxu0 %v3223_v0  ;;  %2951 = vmatprep.subr.mxu1 %v3223_v0  ;;  %v2855_v18 = vunpack.c.l.bf16 %v3343_v17  ;;  %v2856_v19 = vunpack.c.h.bf16 %v3343_v17  ;;  %v2859_v21 = vunpack.c.l.bf16 %v3363_v20  ;;  %v2860_v22 = vunpack.c.h.bf16 %v3363_v20  ;;  %v65_v28 = vld [vmem:[%s3652_s0 + $0x8] sm:$0xff] }
  0x13   :  { %v2863_v24 = vunpack.c.l.bf16 %v3383_v23  ;;  %v2864_v25 = vunpack.c.h.bf16 %v3383_v23  ;;  %3106 = vset.pattern.permute.xlu1 %v3225_v27  ;;  %3107 = vset.pattern.permute.xlu0 %v3225_v27  ;;  %vm1284_vm3 = vcmask 1042434   ;;  %vm1287_vm4 = vcmask 1043459  }
  0x14   :  { %2939 = vmatmul.mubr.msk.f32.vlgmr.msra.gmra.mxu0 %vm66_vm1, %v3279_v5  ;;  %2944 = vmatmul.mubr.msk.f32.vlgmr.msra.gmra.mxu1 %vm66_vm1, %v3279_v5  ;;  %vm1290_vm5 = vcmask 1044484   ;;  %vm1293_vm6 = vcmask 1045509   ;;  %vm1296_vm7 = vcmask 1046534   ;;  %vm1299_vm8 = vcmask 1047559  }
  0x15   :  { %2947 = vmatpush3.xpose.msk.msra.mxu0 %vm66_vm1, %v2839_v6  ;;  %2952 = vmatpush3.xpose.msk.msra.mxu1 %vm66_vm1, %v2840_v7  ;;  %vm1317_vm9 = vcmask 64512  }
  0x16   :  { %2948 = vmatprep.mubr.msk.f32.mxu0 %vm3224_vm0, %v3223_v0  ;;  %2953 = vmatprep.mubr.msk.f32.mxu1 %vm3224_vm0, %v3223_v0 }
  0x17   :  { %2956 = vmatprep.subr.mxu0 %v3223_v0  ;;  %2961 = vmatprep.subr.mxu1 %v3223_v0 }
  0x18   :  { %2949 = vmatmul.mubr.msk.f32.vlgmr.msra.gmra.mxu0 %vm66_vm1, %v3279_v5  ;;  %2954 = vmatmul.mubr.msk.f32.vlgmr.msra.gmra.mxu1 %vm66_vm1, %v3279_v5 }
  0x19   :  { %2957 = vmatpush3.xpose.msk.msra.mxu0 %vm66_vm1, %v2843_v9  ;;  %2962 = vmatpush3.xpose.msk.msra.mxu1 %vm66_vm1, %v2844_v10 }
  0x1a   :  { %2958 = vmatprep.mubr.msk.f32.mxu0 %vm3224_vm0, %v3223_v0  ;;  %2963 = vmatprep.mubr.msk.f32.mxu1 %vm3224_vm0, %v3223_v0 }
  0x1b   :  { %2966 = vmatprep.subr.mxu0 %v3223_v0  ;;  %2971 = vmatprep.subr.mxu1 %v3223_v0 }
  0x1c   :  { %2959 = vmatmul.mubr.msk.f32.vlgmr.msra.gmra.mxu0 %vm66_vm1, %v3279_v5  ;;  %2964 = vmatmul.mubr.msk.f32.vlgmr.msra.gmra.mxu1 %vm66_vm1, %v3279_v5 }
  0x1d   :  { %2967 = vmatpush3.xpose.msk.msra.mxu0 %vm66_vm1, %v2847_v12  ;;  %2972 = vmatpush3.xpose.msk.msra.mxu1 %vm66_vm1, %v2848_v13 }
  0x1e   :  { %2968 = vmatprep.mubr.msk.f32.mxu0 %vm3224_vm0, %v3223_v0  ;;  %2973 = vmatprep.mubr.msk.f32.mxu1 %vm3224_vm0, %v3223_v0 }
  0x1f   :  { %2976 = vmatprep.subr.mxu0 %v3223_v0  ;;  %2981 = vmatprep.subr.mxu1 %v3223_v0 }
  0x20   :  { %2969 = vmatmul.mubr.msk.f32.vlgmr.msra.gmra.mxu0 %vm66_vm1, %v3279_v5  ;;  %2974 = vmatmul.mubr.msk.f32.vlgmr.msra.gmra.mxu1 %vm66_vm1, %v3279_v5 }
  0x21   :  { %2977 = vmatpush3.xpose.msk.msra.mxu0 %vm66_vm1, %v2851_v15  ;;  %2982 = vmatpush3.xpose.msk.msra.mxu1 %vm66_vm1, %v2852_v16 }
  0x22   :  { %2978 = vmatprep.mubr.msk.f32.mxu0 %vm3224_vm0, %v3223_v0  ;;  %2983 = vmatprep.mubr.msk.f32.mxu1 %vm3224_vm0, %v3223_v0 }
  0x23   :  { %2986 = vmatprep.subr.mxu0 %v3223_v0  ;;  %2991 = vmatprep.subr.mxu1 %v3223_v0 }
  0x24   :  { %2979 = vmatmul.mubr.msk.f32.vlgmr.msra.gmra.mxu0 %vm66_vm1, %v3279_v5  ;;  %2984 = vmatmul.mubr.msk.f32.vlgmr.msra.gmra.mxu1 %vm66_vm1, %v3279_v5 }
  0x25   :  { %2987 = vmatpush3.xpose.msk.msra.mxu0 %vm66_vm1, %v2855_v18  ;;  %2992 = vmatpush3.xpose.msk.msra.mxu1 %vm66_vm1, %v2856_v19 }
  0x26   :  { %2988 = vmatprep.mubr.msk.f32.mxu0 %vm3224_vm0, %v3223_v0  ;;  %2993 = vmatprep.mubr.msk.f32.mxu1 %vm3224_vm0, %v3223_v0 }
  0x27   :  { %2996 = vmatprep.subr.mxu0 %v3223_v0  ;;  %3001 = vmatprep.subr.mxu1 %v3223_v0 }
  0x28   :  { %2989 = vmatmul.mubr.msk.f32.vlgmr.msra.gmra.mxu0 %vm66_vm1, %v3279_v5  ;;  %2994 = vmatmul.mubr.msk.f32.vlgmr.msra.gmra.mxu1 %vm66_vm1, %v3279_v5 }
  0x29   :  { %2997 = vmatpush3.xpose.msk.msra.mxu0 %vm66_vm1, %v2859_v21  ;;  %3002 = vmatpush3.xpose.msk.msra.mxu1 %vm66_vm1, %v2860_v22 }
  0x2a   :  { %2998 = vmatprep.mubr.msk.f32.mxu0 %vm3224_vm0, %v3223_v0  ;;  %3003 = vmatprep.mubr.msk.f32.mxu1 %vm3224_vm0, %v3223_v0 }
  0x2b   :  { %3006 = vmatprep.subr.mxu0 %v3223_v0  ;;  %3011 = vmatprep.subr.mxu1 %v3223_v0 }
  0x2c   :  { %2999 = vmatmul.mubr.msk.f32.vlgmr.msra.gmra.mxu0 %vm66_vm1, %v3279_v5  ;;  %3004 = vmatmul.mubr.msk.f32.vlgmr.msra.gmra.mxu1 %vm66_vm1, %v3279_v5 }
  0x2d   :  { %3007 = vmatpush3.xpose.msk.msra.mxu0 %vm66_vm1, %v2863_v24  ;;  %3012 = vmatpush3.xpose.msk.msra.mxu1 %vm66_vm1, %v2864_v25 }
  0x2e   :  { %3008 = vmatprep.mubr.msk.f32.mxu0 %vm3224_vm0, %v3223_v0  ;;  %3013 = vmatprep.mubr.msk.f32.mxu1 %vm3224_vm0, %v3223_v0 }
  0x2f   :  { %3016 = vmatprep.subr.mxu0 %v3223_v0  ;;  %3021 = vmatprep.subr.mxu1 %v3223_v0 }
  0x30   :  { %3009 = vmatmul.mubr.msk.f32.vlgmr.msra.gmra.mxu0 %vm66_vm1, %v3279_v5  ;;  %3014 = vmatmul.mubr.msk.f32.vlgmr.msra.gmra.mxu1 %vm66_vm1, %v3279_v5 }
  0x31   :  { %3017 = vmatpush3.msra.mxu0 %v2835_v3  ;;  %3018 = vmatprep.mubr.msk.f32.mxu0 %vm3224_vm0, %v3223_v0 }
  0x32   :  { %3022 = vmatpush3.msra.mxu1 %v2836_v4  ;;  %3023 = vmatprep.mubr.msk.f32.mxu1 %vm3224_vm0, %v3223_v0 }
  0x33   :  { %3026 = vmatprep.subr.mxu0 %v3223_v0  ;;  %3031 = vmatprep.subr.mxu1 %v3223_v0 }
  0x34   :  { %1257 = vperm.xlu1 %3106, %v64_v26  }
  0x38   :  { %1260 = vperm.xlu1 %3106, %v65_v28  }
  0xd4   :  { %v139_v29 = vpop.f32.mrf.mxu0  ;;  %v212_v30 = vpop.f32.mrf.mxu1 }
  0xd5   :  { %3108 = vtanh.f32 %v212_v30 }
  0xd6   :  { %v2940_v31 = vpop.f32.mrf.mxu0  ;;  %v2945_v32 = vpop.f32.mrf.mxu1  ;;  %3110 = vtanh.f32 %v139_v29 }
  0xd8   :  { %v285_v33 = vpop.f32.mrf.mxu0  ;;  %v358_v34 = vpop.f32.mrf.mxu1 }
  0xd9   :  { %3112 = vtanh.f32 %v285_v33 }
  0xda   :  { %3114 = vtanh.f32 %v358_v34  ;;  %v2950_v35 = vpop.f32.mrf.mxu0  ;;  %v2955_v36 = vpop.f32.mrf.mxu1 }
  0xdc   :  { %v431_v37 = vpop.f32.mrf.mxu0  ;;  %v504_v38 = vpop.f32.mrf.mxu1 }
  0xdd   :  { %3116 = vtanh.f32 %v431_v37 }
  0xde   :  { %3118 = vtanh.f32 %v504_v38  ;;  %v2960_v39 = vpop.f32.mrf.mxu0  ;;  %v2965_v40 = vpop.f32.mrf.mxu1 }
  0xe0   :  { %v577_v41 = vpop.f32.mrf.mxu0  ;;  %v650_v42 = vpop.f32.mrf.mxu1 }
  0xe1   :  { %3120 = vtanh.f32 %v577_v41 }
  0xe2   :  { %3122 = vtanh.f32 %v650_v42  ;;  %v2970_v43 = vpop.f32.mrf.mxu0  ;;  %v2975_v44 = vpop.f32.mrf.mxu1 }
  0xe3   :  { %v3441_v45 = vpop.eup %3108 }
  0xe4   :  { %v1280_v46 = vrot.slane %v3441_v45, 7  ;;  %v723_v47 = vpop.f32.mrf.mxu0  ;;  %v796_v48 = vpop.f32.mrf.mxu1 }
  0xe5   :  { %v3444_v49 = vpop.eup %3110  ;;  %3124 = vtanh.f32 %v796_v48 }
  0xe6   :  { %v3446_v50 = vpop.eup %3112  ;;  %v2980_v51 = vpop.f32.mrf.mxu0  ;;  %3126 = vtanh.f32 %v723_v47  ;;  %v1282_v57 = vsel %vm1281_vm2, %v1280_v46, %v3444_v49 }
  0xe7   :  { %v2985_v52 = vpop.f32.mrf.mxu1  ;;  %v3448_v53 = vpop.eup %3114  ;;  %v1283_v54 = vrot.slane %v3446_v50, 6 }
  0xe8   :  { %v869_v55 = vpop.f32.mrf.mxu0  ;;  %v1286_v58 = vrot.slane %v3448_v53, 5 }
  0xe9   :  { %v942_v56 = vpop.f32.mrf.mxu1  ;;  %3128 = vtanh.f32 %v869_v55  ;;  %v1285_v59 = vsel %vm1284_vm3, %v1283_v54, %v1282_v57 }
  0xea   :  { %v3455_v60 = vpop.eup %3116  ;;  %3130 = vtanh.f32 %v942_v56  ;;  %v2990_v61 = vpop.f32.mrf.mxu0  ;;  %v1288_v5 = vsel %vm1287_vm4, %v1286_v58, %v1285_v59 }
  0xeb   :  { %v2995_v62 = vpop.f32.mrf.mxu1  ;;  %v3457_v63 = vpop.eup %3118  ;;  %v1289_v1 = vrot.slane %v3455_v60, 4 }
  0xec   :  { %v1015_v3 = vpop.f32.mrf.mxu0  ;;  %v1292_v26 = vrot.slane %v3457_v63, 3 }
  0xed   :  { %v1088_v4 = vpop.f32.mrf.mxu1  ;;  %3132 = vtanh.f32 %v1015_v3  ;;  %v1291_v27 = vsel %vm1290_vm5, %v1289_v1, %v1288_v5 }
  0xee   :  { %v3121_v28 = vpop.eup %3120  ;;  %3134 = vtanh.f32 %v1088_v4  ;;  %v3000_v29 = vpop.f32.mrf.mxu0  ;;  %v1294_v35 = vsel %vm1293_vm6, %v1292_v26, %v1291_v27 }
  0xef   :  { %v3005_v30 = vpop.f32.mrf.mxu1  ;;  %v3123_v31 = vpop.eup %3122  ;;  %v1295_v32 = vrot.slane %v3121_v28, 2 }
  0xf0   :  { %v1161_v33 = vpop.f32.mrf.mxu0  ;;  %v1298_v36 = vrot.slane %v3123_v31, 1 }
  0xf1   :  { %v1234_v34 = vpop.f32.mrf.mxu1  ;;  %3136 = vtanh.f32 %v1161_v33  ;;  %v1297_v37 = vsel %vm1296_vm7, %v1295_v32, %v1294_v35 }
  0xf2   :  { %3138 = vtanh.f32 %v1234_v34  ;;  %v3010_v38 = vpop.f32.mrf.mxu0  ;;  %v1300_v40 = vsel %vm1299_vm8, %v1298_v36, %v1297_v37  ;;  %v3466_v41 = vpop.eup %3124 }
  0xf3   :  { %v3015_v39 = vpop.f32.mrf.mxu1  ;;  %v1318_v42 = vsel %vm1317_vm9, %v1300_v40, -inf  ;;  %v1301_v43 = vrot.slane %v3466_v41, 7  ;;  %v3470_v44 = vpop.eup %3126 }
  0xf4   :  { %1319 = vmax.xlane.f32.xlu0 %v1318_v42 }
  0xf5   :  { %v1302_v52 = vsel %vm1281_vm2, %v1301_v43, %v3470_v44 }
  0xf6   :  { %v3472_v46 = vpop.eup %3128 }
  0xf7   :  { %v3474_v47 = vpop.eup %3130  ;;  %v1303_v48 = vrot.slane %v3472_v46, 6 }
  0xf8   :  { %v1305_v51 = vrot.slane %v3474_v47, 5 }
  0xf9   :  { %v1304_v54 = vsel %vm1284_vm3, %v1303_v48, %v1302_v52 }
  0xfa   :  { %v3133_v55 = vpop.eup %3132  ;;  %v1306_v58 = vsel %vm1287_vm4, %v1305_v51, %v1304_v54 }
  0xfb   :  { %v3481_v56 = vpop.eup %3134  ;;  %v1307_v57 = vrot.slane %v3133_v55, 4 }
  0xfc   :  { %v1309_v59 = vrot.slane %v3481_v56, 3 }
  0xfd   :  { %v1308_v61 = vsel %vm1290_vm5, %v1307_v57, %v1306_v58 }
  0xfe   :  { %v3137_v62 = vpop.eup %3136  ;;  %v1310_v4 = vsel %vm1293_vm6, %v1309_v59, %v1308_v61 }
  0xff   :  { %v3486_v1 = vpop.eup %3138  ;;  %v1311_v3 = vrot.slane %v3137_v62, 2 }
 0x100   :  { %v1313_v5 = vrot.slane %v3486_v1, 1 }
 0x101   :  { %v1312_v26 = vsel %vm1296_vm7, %v1311_v3, %v1310_v4 }
 0x102   :  { %v1314_v27 = vsel %vm1299_vm8, %v1313_v5, %v1312_v26 }
 0x103   :  { %v1321_v29 = vsel %vm1317_vm9, %v1314_v27, -inf }
 0x104   :  { %1322 = vmax.xlane.f32.xlu0 %v1321_v29 }
 0x17d   :  { %v1320_v30 = vpop.xlane.xlu0 %1319 }
 0x17e   :  { %v1326_v32 = vrot.slane %v1320_v30, 1  ;;  %v1327_v33 = vrot.slane %v1320_v30, 2  ;;  %v1328_v34 = vrot.slane %v1320_v30, 3  ;;  %v1329_v35 = vrot.slane %v1320_v30, 4 }
 0x17f   :  { %v1356_v36 = vsub.f32 %v3444_v49, %v1320_v30  ;;  %v1330_v37 = vrot.slane %v1320_v30, 5  ;;  %v1331_v38 = vrot.slane %v1320_v30, 6  ;;  %v1332_v39 = vrot.slane %v1320_v30, 7 }
 0x180   :  { %v1357_v40 = vsub.f32 %v3441_v45, %v1326_v32  ;;  %v1358_v42 = vsub.f32 %v3446_v50, %v1327_v33  ;;  %v1359_v43 = vsub.f32 %v3448_v53, %v1328_v34  ;;  %v1360_v48 = vsub.f32 %v3455_v60, %v1329_v35 }
 0x181   :  { %v1372_v51 = vmul.f32 1.442695, %v1356_v36  ;;  %v1361_v52 = vsub.f32 %v3457_v63, %v1330_v37  ;;  %v1362_v54 = vsub.f32 %v3121_v28, %v1331_v38  ;;  %v1363_v58 = vsub.f32 %v3123_v31, %v1332_v39 }
 0x182   :  { %v1374_v57 = vmul.f32 1.442695, %v1357_v40  ;;  %v1376_v59 = vmul.f32 1.442695, %v1358_v42  ;;  %v1378_v61 = vmul.f32 1.442695, %v1359_v43  ;;  %v1254_v60 = vlaneseq }
 0x183   :  { %3140 = vpow2.f32 %v1372_v51  ;;  %v1380_v49 = vmul.f32 1.442695, %v1360_v48  ;;  %v1382_v3 = vmul.f32 1.442695, %v1361_v52  ;;  %v1384_v45 = vmul.f32 1.442695, %v1362_v54 }
 0x184   :  { %3142 = vpow2.f32 %v1374_v57  ;;  %v1386_v50 = vmul.f32 1.442695, %v1363_v58  ;;  %v3504_v38 = vand.u32 127, %v1254_v60 }
 0x185   :  { %3144 = vpow2.f32 %v1376_v59 }
 0x186   :  { %3146 = vpow2.f32 %v1378_v61 }
 0x187   :  { %3148 = vpow2.f32 %v1380_v49 }
 0x188   :  { %3150 = vpow2.f32 %v1382_v3 }
 0x189   :  { %3152 = vpow2.f32 %v1384_v45 }
 0x18a   :  { %3154 = vpow2.f32 %v1386_v50 }
 0x18d   :  { %v1323_v53 = vpop.xlane.xlu0 %1322 }
 0x18e   :  { %v1333_v63 = vrot.slane %v1323_v53, 1  ;;  %v1334_v28 = vrot.slane %v1323_v53, 2  ;;  %v1335_v4 = vrot.slane %v1323_v53, 3  ;;  %v1336_v31 = vrot.slane %v1323_v53, 4 }
 0x18f   :  { %v1364_v5 = vsub.f32 %v3470_v44, %v1323_v53  ;;  %v1337_v26 = vrot.slane %v1323_v53, 5  ;;  %v1338_v27 = vrot.slane %v1323_v53, 6  ;;  %v1339_v29 = vrot.slane %v1323_v53, 7  ;;  %v1258_v53 = vpop.permute.xlu1 %1257 }
 0x190   :  { %v3141_v30 = vpop.eup %3140  ;;  %v1365_v32 = vsub.f32 %v3466_v41, %v1333_v63  ;;  %v1366_v33 = vsub.f32 %v3472_v46, %v1334_v28  ;;  %v1367_v34 = vsub.f32 %v3474_v47, %v1335_v4  ;;  %v1368_v35 = vsub.f32 %v3133_v55, %v1336_v31 }
 0x191   :  { %v3143_v36 = vpop.eup %3142  ;;  %v1388_v37 = vmul.f32 1.442695, %v1364_v5  ;;  %v1369_v39 = vsub.f32 %v3481_v56, %v1337_v26  ;;  %v1370_v40 = vsub.f32 %v3137_v62, %v1338_v27  ;;  %v1371_v48 = vsub.f32 %v3486_v1, %v1339_v29 }
 0x192   :  { %v3145_v44 = vpop.eup %3144  ;;  %v1390_v42 = vmul.f32 1.442695, %v1365_v32  ;;  %v1420_v43 = vrot.slane %v3143_v36, 7  ;;  %v1392_v51 = vmul.f32 1.442695, %v1366_v33  ;;  %vm1262_vm10 = vcmp.lt.s32.totalorder %v3504_v38, %v1258_v53 }
 0x193   :  { %v3147_v41 = vpop.eup %3146  ;;  %3156 = vpow2.f32 %v1388_v37  ;;  %v1422_v46 = vrot.slane %v3145_v44, 6  ;;  %v1394_v52 = vmul.f32 1.442695, %v1367_v34  ;;  %v1396_v47 = vmul.f32 1.442695, %v1368_v35 }
 0x194   :  { %v3149_v55 = vpop.eup %3148  ;;  %3158 = vpow2.f32 %v1390_v42  ;;  %v1421_v54 = vsel %vm1281_vm2, %v1420_v43, %v3141_v30  ;;  %v1424_v57 = vrot.slane %v3147_v41, 5  ;;  %v1398_v58 = vmul.f32 1.442695, %v1369_v39 }
 0x195   :  { %v3151_v59 = vpop.eup %3150  ;;  %v1423_v56 = vsel %vm1284_vm3, %v1422_v46, %v1421_v54  ;;  %v1426_v62 = vrot.slane %v3149_v55, 4  ;;  %3160 = vpow2.f32 %v1392_v51  ;;  %v1400_v61 = vmul.f32 1.442695, %v1370_v40 }
 0x196   :  { %v3153_v49 = vpop.eup %3152  ;;  %v1425_v1 = vsel %vm1287_vm4, %v1424_v57, %v1423_v56  ;;  %v1428_v3 = vrot.slane %v3151_v59, 3  ;;  %3162 = vpow2.f32 %v1394_v52  ;;  %v1402_v45 = vmul.f32 1.442695, %v1371_v48  ;;  %v1261_v52 = vpop.permute.xlu1 %1260 }
 0x197   :  { %v3155_v50 = vpop.eup %3154  ;;  %v1427_v63 = vsel %vm1290_vm5, %v1426_v62, %v1425_v1  ;;  %v1430_v28 = vrot.slane %v3153_v49, 2  ;;  %3164 = vpow2.f32 %v1396_v47  ;;  %vm1263_vm11 = vcmp.lt.s32.totalorder %v3504_v38, %v1261_v52 }
 0x198   :  { %v1429_v4 = vsel %vm1293_vm6, %v1428_v3, %v1427_v63  ;;  %v1432_v31 = vrot.slane %v3155_v50, 1  ;;  %3166 = vpow2.f32 %v1398_v58  ;;  %v3226_v49 = vmov 1966171168  }
 0x199   :  { %v1431_v5 = vsel %vm1296_vm7, %v1430_v28, %v1429_v4  ;;  %3168 = vpow2.f32 %v1400_v61  ;;  %v1466_v1 = vunpack.c.l.s4 %v3226_v49 }
 0x19a   :  { %v1433_v26 = vsel %vm1299_vm8, %v1432_v31, %v1431_v5  ;;  %3170 = vpow2.f32 %v1402_v45  ;;  %v1469_v45 = vshrl.u32 %v1254_v60, 7 }
 0x19b   :  { %v1450_v27 = vsel %vm1262_vm10, %v1433_v26, 0.0  ;;  %v1467_v3 = vunpack.c.0.s8 %v1466_v1 }
 0x19c   :  { %v1452_v29 = vsel %vm1317_vm9, %v1450_v27, 0.0 }
 0x19d   :  { %1453 = vadd.xlane.f32.xlu0 %v1452_v29  ;;  %v3527_v50 = vsub.s32 %v1467_v3, %v1469_v45 }
 0x1a0   :  { %v3157_v30 = vpop.eup %3156 }
 0x1a1   :  { %v3159_v32 = vpop.eup %3158 }
 0x1a2   :  { %v3161_v33 = vpop.eup %3160  ;;  %v1434_v34 = vrot.slane %v3159_v32, 7 }
 0x1a3   :  { %v3163_v35 = vpop.eup %3162  ;;  %v1436_v36 = vrot.slane %v3161_v33, 6 }
 0x1a4   :  { %v3165_v37 = vpop.eup %3164  ;;  %v1435_v39 = vsel %vm1281_vm2, %v1434_v34, %v3157_v30  ;;  %v1438_v40 = vrot.slane %v3163_v35, 5 }
 0x1a5   :  { %v3167_v44 = vpop.eup %3166  ;;  %v1437_v42 = vsel %vm1284_vm3, %v1436_v36, %v1435_v39  ;;  %v1440_v43 = vrot.slane %v3165_v37, 4 }
 0x1a6   :  { %v3169_v48 = vpop.eup %3168  ;;  %v1439_v51 = vsel %vm1287_vm4, %v1438_v40, %v1437_v42  ;;  %v1442_v41 = vrot.slane %v3167_v44, 3 }
 0x1a7   :  { %v3171_v46 = vpop.eup %3170  ;;  %v1441_v47 = vsel %vm1290_vm5, %v1440_v43, %v1439_v51  ;;  %v1444_v55 = vrot.slane %v3169_v48, 2 }
 0x1a8   :  { %v1443_v54 = vsel %vm1293_vm6, %v1442_v41, %v1441_v47  ;;  %v1446_v57 = vrot.slane %v3171_v46, 1 }
 0x1a9   :  { %v1445_v58 = vsel %vm1296_vm7, %v1444_v55, %v1443_v54 }
 0x1aa   :  { %v1447_v59 = vsel %vm1299_vm8, %v1446_v57, %v1445_v58 }
 0x1ab   :  { %v1451_v56 = vsel %vm1263_vm11, %v1447_v59, 0.0 }
 0x1ac   :  { %v1455_v62 = vsel %vm1317_vm9, %v1451_v56, 0.0 }
 0x1ad   :  { %1456 = vadd.xlane.f32.xlu1 %v1455_v62 }
 0x226   :  { %v1454_v61 = vpop.xlane.xlu0 %1453 }
 0x227   :  { %3172 = vrcp.f32 %v1454_v61 }
 0x234   :  { %v3173_v53 = vpop.eup %3172 }
 0x235   :  { %v1459_v63 = vmul.f32 %v3173_v53, %v1450_v27 }
 0x236   :  { %v1457_v28 = vpop.xlane.xlu1 %1456 }
 0x237   :  { %2762 = vst.msk [vmem:[%s3656_s4] sm:$0xff] %vm1317_vm9, %v1459_v63  ;;  %3174 = vrcp.f32 %v1457_v28  ;;  %v1471_v38 = vrot.slane %v1459_v63, %v3527_v50  ;;  %v1464_v4 = vcombine.high %v1459_v63, %v1459_v63 }
 0x239   :  { %v1487_v31 = vrot.slane %v1471_v38, %v3527_v50  ;;  %v1479_v5 = vcombine.high %v1471_v38, %v1471_v38  ;;  %v1478_v26 = vrot.slane %v1464_v4, %v3527_v50 }
 0x23b   :  { %3019 = vmatmul.mubr.msk.f32.vlgmr.msra.gmra.mxu0 %vm1317_vm9, %v1487_v31  ;;  %v1501_v60 = vrot.slane %v1479_v5, %v3527_v50  ;;  %v1509_v27 = vcombine.high %v1487_v31, %v1487_v31  ;;  %v1494_v2 = vrot.slane %v1478_v26, %v3527_v50 }
 0x23c   :  { %3027 = vmatpush3.msra.mxu0 %v2839_v6  ;;  %3028 = vmatprep.mubr.msk.f32.mxu0 %vm3224_vm0, %v3223_v0  ;;  %v1480_v6 = vcombine.high %v1478_v26, %v1478_v26 }
 0x23d   :  { %3024 = vmatmul.mubr.msk.f32.vlgmr.msra.gmra.mxu1 %vm1317_vm9, %v1501_v60  ;;  %3036 = vmatprep.subr.mxu0 %v3223_v0  ;;  %v1511_v29 = vcombine.high %v1501_v60, %v1501_v60  ;;  %v1510_v8 = vcombine.high %v1494_v2, %v1494_v2 }
 0x23e   :  { %3032 = vmatpush3.msra.mxu1 %v2840_v7  ;;  %3033 = vmatprep.mubr.msk.f32.mxu1 %vm3224_vm0, %v3223_v0  ;;  %v1508_v7 = vrot.slane %v1480_v6, %v3527_v50 }
 0x23f   :  { %3029 = vmatmul.mubr.msk.f32.vlgmr.msra.gmra.mxu0 %vm1317_vm9, %v1509_v27  ;;  %3041 = vmatprep.subr.mxu1 %v3223_v0 }
 0x240   :  { %3037 = vmatpush3.msra.mxu0 %v2843_v9  ;;  %3038 = vmatprep.mubr.msk.f32.mxu0 %vm3224_vm0, %v3223_v0 }
 0x241   :  { %3034 = vmatmul.mubr.msk.f32.vlgmr.msra.gmra.mxu1 %vm1317_vm9, %v1511_v29  ;;  %3046 = vmatprep.subr.mxu0 %v3223_v0 }
 0x242   :  { %3042 = vmatpush3.msra.mxu1 %v2844_v10  ;;  %3043 = vmatprep.mubr.msk.f32.mxu1 %vm3224_vm0, %v3223_v0  ;;  %v1512_v10 = vcombine.high %v1508_v7, %v1508_v7 }
 0x243   :  { %3039 = vmatmul.mubr.msk.f32.vlgmr.msra.gmra.mxu0 %vm1317_vm9, %v1494_v2  ;;  %3051 = vmatprep.subr.mxu1 %v3223_v0 }
 0x244   :  { %v3175_v9 = vpop.eup %3174  ;;  %3047 = vmatpush3.msra.mxu0 %v2847_v12  ;;  %3048 = vmatprep.mubr.msk.f32.mxu0 %vm3224_vm0, %v3223_v0 }
 0x245   :  { %v1461_v30 = vmul.f32 %v3175_v9, %v1451_v56  ;;  %3044 = vmatmul.mubr.msk.f32.vlgmr.msra.gmra.mxu1 %vm1317_vm9, %v1508_v7  ;;  %3056 = vmatprep.subr.mxu0 %v3223_v0 }
 0x246   :  { %3052 = vmatpush3.msra.mxu1 %v2848_v13  ;;  %3053 = vmatprep.mubr.msk.f32.mxu1 %vm3224_vm0, %v3223_v0 }
 0x247   :  { %2763 = vst.msk [vmem:[%s3656_s4 + $0x8] sm:$0xff] %vm1317_vm9, %v1461_v30  ;;  %3049 = vmatmul.mubr.msk.f32.vlgmr.msra.gmra.mxu0 %vm1317_vm9, %v1510_v8  ;;  %3061 = vmatprep.subr.mxu1 %v3223_v0  ;;  %v1520_v12 = vrot.slane %v1461_v30, %v3527_v50  ;;  %v1513_v32 = vcombine.high %v1461_v30, %v1461_v30  ;;  %s3227_s4 = smov [#allocation5]  }
 0x248   :  { %3057 = vmatpush3.msra.mxu0 %v2851_v15  ;;  %3058 = vmatprep.mubr.msk.f32.mxu0 %vm3224_vm0, %v3223_v0  ;;  %s2769_s29 = sshll.u32 %s3227_s4, 4  ;;  %s2770_s29 = int_to_ptr.vmem [resolvable:$true] %s2769_s29 }
 0x249   :  { %3054 = vmatmul.mubr.msk.f32.vlgmr.msra.gmra.mxu1 %vm1317_vm9, %v1512_v10  ;;  %v1536_v11 = vrot.slane %v1520_v12, %v3527_v50  ;;  %3066 = vmatprep.subr.mxu0 %v3223_v0  ;;  %v1528_v13 = vcombine.high %v1520_v12, %v1520_v12  ;;  %v1527_v33 = vrot.slane %v1513_v32, %v3527_v50  ;;  %s3196_s30 = scalar_lea.vmem %s2770_s29, 256  ;;  %p3201_p6 = scmp.lt.s32.totalorder %s2770_s29, %s2770_s29 }
 0x24a   :  { %3062 = vmatpush3.msra.mxu1 %v2852_v16  ;;  %3063 = vmatprep.mubr.msk.f32.mxu1 %vm3224_vm0, %v3223_v0  ;;  %p3197_p5 = scmp.ne.s32.totalorder %s2770_s29, %s3196_s30  ;;  %p3202_p7 = scmp.lt.s32.totalorder %s3196_s30, %s3196_s30 }
 0x24b   :  { %3059 = vmatmul.mubr.msk.f32.vlgmr.msra.gmra.mxu0 %vm1317_vm9, %v1536_v11  ;;  %v1550_v15 = vrot.slane %v1528_v13, %v3527_v50  ;;  %3071 = vmatprep.subr.mxu1 %v3223_v0  ;;  %v1558_v14 = vcombine.high %v1536_v11, %v1536_v11  ;;  %v1543_v17 = vrot.slane %v1527_v33, %v3527_v50 }
 0x24c   :  { %3067 = vmatpush3.msra.mxu0 %v2855_v18  ;;  %3068 = vmatprep.mubr.msk.f32.mxu0 %vm3224_vm0, %v3223_v0  ;;  %v1529_v18 = vcombine.high %v1527_v33, %v1527_v33  ;;  %p3203_p8 = por %p3202_p7, %p3201_p6 }
 0x24d   :  { %3064 = vmatmul.mubr.msk.f32.vlgmr.msra.gmra.mxu1 %vm1317_vm9, %v1550_v15  ;;  %3076 = vmatprep.subr.mxu0 %v3223_v0  ;;  %v1560_v16 = vcombine.high %v1550_v15, %v1550_v15 }
 0x24e   :  { %3072 = vmatpush3.msra.mxu1 %v2856_v19  ;;  %3073 = vmatprep.mubr.msk.f32.mxu1 %vm3224_vm0, %v3223_v0  ;;  %v1557_v19 = vrot.slane %v1529_v18, %v3527_v50  ;;  %p3204_p9 = pnand %p3203_p8, %p3197_p5 }
 0x24f   :  { %3069 = vmatmul.mubr.msk.f32.vlgmr.msra.gmra.mxu0 %vm1317_vm9, %v1558_v14  ;;  %3081 = vmatprep.subr.mxu1 %v3223_v0 }
 0x250   :  { %3077 = vmatpush3.msra.mxu0 %v2859_v21  ;;  %3078 = vmatprep.mubr.msk.f32.mxu0 %vm3224_vm0, %v3223_v0  ;;  %v1559_v21 = vcombine.high %v1543_v17, %v1543_v17  ;;  %v1561_v20 = vcombine.high %v1557_v19, %v1557_v19 }
 0x251   :  { %3074 = vmatmul.mubr.msk.f32.vlgmr.msra.gmra.mxu1 %vm1317_vm9, %v1560_v16  ;;  %3086 = vmatprep.subr.mxu0 %v3223_v0 }
 0x252   :  { %3082 = vmatpush3.msra.mxu1 %v2860_v22  ;;  %3083 = vmatprep.mubr.msk.f32.mxu1 %vm3224_vm0, %v3223_v0 }
 0x253   :  { %3079 = vmatmul.mubr.msk.f32.vlgmr.msra.gmra.mxu0 %vm1317_vm9, %v1543_v17  ;;  %3091 = vmatprep.subr.mxu1 %v3223_v0 }
 0x254   :  { %3087 = vmatpush3.msra.mxu0 %v2863_v24  ;;  %3088 = vmatprep.mubr.msk.f32.mxu0 %vm3224_vm0, %v3223_v0 }
 0x255   :  { %3084 = vmatmul.mubr.msk.f32.vlgmr.msra.gmra.mxu1 %vm1317_vm9, %v1557_v19 }
 0x256   :  { %3092 = vmatpush3.msra.mxu1 %v2864_v25  ;;  %3093 = vmatprep.mubr.msk.f32.mxu1 %vm3224_vm0, %v3223_v0 }
 0x257   :  { %3089 = vmatmul.mubr.msk.f32.vlgmr.msra.gmra.mxu0 %vm1317_vm9, %v1559_v21 }
 0x259   :  { %3094 = vmatmul.mubr.msk.f32.vlgmr.msra.gmra.mxu1 %vm1317_vm9, %v1561_v20 }
 0x2fb   :  { %v1630_v22 = vpop.f32.mrf.mxu0 }
 0x2fd   :  { %v3020_v34 = vpop.f32.mrf.mxu0  ;;  %v1702_v24 = vpop.f32.mrf.mxu1 }
 0x2fe   :  { %v2730_v35 = vrot.slane %v1702_v24, 7 }
 0x2ff   :  { %v3025_v36 = vpop.f32.mrf.mxu1  ;;  %v1774_v37 = vpop.f32.mrf.mxu0 }
 0x300   :  { %v2731_v39 = vsel %vm1281_vm2, %v2730_v35, %v1630_v22  ;;  %v2732_v40 = vrot.slane %v1774_v37, 6 }
 0x301   :  { %v3030_v44 = vpop.f32.mrf.mxu0  ;;  %v1846_v23 = vpop.f32.mrf.mxu1 }
 0x302   :  { %v2733_v25 = vsel %vm1284_vm3, %v2732_v40, %v2731_v39  ;;  %v2734_v42 = vrot.slane %v1846_v23, 5 }
 0x303   :  { %v3035_v0 = vpop.f32.mrf.mxu1  ;;  %v1918_v43 = vpop.f32.mrf.mxu0 }
 0x304   :  { %v2735_v48 = vsel %vm1287_vm4, %v2734_v42, %v2733_v25  ;;  %v2736_v51 = vrot.slane %v1918_v43, 4 }
 0x305   :  { %v3040_v41 = vpop.f32.mrf.mxu0  ;;  %v1990_v46 = vpop.f32.mrf.mxu1 }
 0x306   :  { %v2737_v52 = vsel %vm1290_vm5, %v2736_v51, %v2735_v48  ;;  %v2738_v47 = vrot.slane %v1990_v46, 3 }
 0x307   :  { %v3045_v55 = vpop.f32.mrf.mxu1  ;;  %v2062_v54 = vpop.f32.mrf.mxu0 }
 0x308   :  { %v2739_v57 = vsel %vm1293_vm6, %v2738_v47, %v2737_v52  ;;  %v2740_v58 = vrot.slane %v2062_v54, 2 }
 0x309   :  { %v3050_v59 = vpop.f32.mrf.mxu0  ;;  %v2134_v56 = vpop.f32.mrf.mxu1 }
 0x30a   :  { %v2741_v62 = vsel %vm1296_vm7, %v2740_v58, %v2739_v57  ;;  %v2742_v61 = vrot.slane %v2134_v56, 1 }
 0x30b   :  { %v3055_v49 = vpop.f32.mrf.mxu1  ;;  %v2206_v1 = vpop.f32.mrf.mxu0 }
 0x30c   :  { %v2743_v3 = vsel %vm1299_vm8, %v2742_v61, %v2741_v62 }
 0x30d   :  { %2760 = vst.msk [vmem:[#allocation5] sm:$0xff] %vm66_vm1, %v2743_v3  ;;  %v3060_v45 = vpop.f32.mrf.mxu0  ;;  %v2278_v50 = vpop.f32.mrf.mxu1 }
 0x30e   :  { %v2744_v53 = vrot.slane %v2278_v50, 7 }
 0x30f   :  { %v3065_v63 = vpop.f32.mrf.mxu1  ;;  %v2350_v28 = vpop.f32.mrf.mxu0 }
 0x310   :  { %v2745_v38 = vsel %vm1281_vm2, %v2744_v53, %v2206_v1  ;;  %v2746_v4 = vrot.slane %v2350_v28, 6 }
 0x311   :  { %v3070_v31 = vpop.f32.mrf.mxu0  ;;  %v2422_v5 = vpop.f32.mrf.mxu1 }
 0x312   :  { %v2747_v60 = vsel %vm1284_vm3, %v2746_v4, %v2745_v38  ;;  %v2748_v26 = vrot.slane %v2422_v5, 5 }
 0x313   :  { %v3075_v27 = vpop.f32.mrf.mxu1  ;;  %v2494_v29 = vpop.f32.mrf.mxu0 }
 0x314   :  { %v2749_v6 = vsel %vm1287_vm4, %v2748_v26, %v2747_v60  ;;  %v2750_v2 = vrot.slane %v2494_v29, 4 }
 0x315   :  { %v3080_v7 = vpop.f32.mrf.mxu0  ;;  %v2566_v9 = vpop.f32.mrf.mxu1 }
 0x316   :  { %v2751_v30 = vsel %vm1290_vm5, %v2750_v2, %v2749_v6  ;;  %v2752_v8 = vrot.slane %v2566_v9, 3 }
 0x317   :  { %v3085_v10 = vpop.f32.mrf.mxu1  ;;  %v2638_v12 = vpop.f32.mrf.mxu0 }
 0x318   :  { %v2753_v32 = vsel %vm1293_vm6, %v2752_v8, %v2751_v30  ;;  %v2754_v11 = vrot.slane %v2638_v12, 2 }
 0x319   :  { %v3090_v13 = vpop.f32.mrf.mxu0  ;;  %v2710_v15 = vpop.f32.mrf.mxu1 }
 0x31a   :  { %v2755_v33 = vsel %vm1296_vm7, %v2754_v11, %v2753_v32  ;;  %v2756_v14 = vrot.slane %v2710_v15, 1 }
 0x31b   :  { %v3095_v16 = vpop.f32.mrf.mxu1 }
 0x31c   :  { %v2757_v18 = vsel %vm1299_vm8, %v2756_v14, %v2755_v33 }
 0x31d   :  { %2761 = vst.msk [vmem:[#allocation5 + $0x8] sm:$0xff] %vm66_vm1, %v2757_v18 }
 0x31e   :  { %3207 = shalt.err (!%p3204_p9)
}
 0x31f   :  { %s3228_s5 = smov 128   ;;  %s3229_s6 = smov 8  }
 0x320   :  { %2775 = dma.vmem_to_hbm [thread:$0]  %s2770_s29, 256, %s3655_s3, [#allocation4], %s3228_s5, %s3228_s5, %s3229_s6  }
 0x321   :  { %3218 = dma.done.wait [#allocation4], 256  }
 0x322   :  { %3219 = vsyncadd [#allocation4], 4294967040 }
 0x323   :  { %2783 = vsyncpa [#allocation3], 1 }
 0x324   :  { %2784 = vsyncpa [#allocation4], 1 }

</bundles_post_ra>
